<compile_context>
chip_gen: v7x
topology: tpu7x:2x2x1
jax: 0.10.0
libtpu: 0.0.40
codegen_flags: <defaults>
</compile_context>

<pallas_src>
import math
import functools

import jax
import jax.numpy as jnp
from jax import lax
from jax.experimental import pallas as pl
from jax.experimental.pallas import tpu as pltpu

_LANE = 128
_TARGET_BLOCK_BYTES = 2 << 20  # ~2 MiB per block (3 streams x 2 bufs = 12 MiB live)


# ----------------------------------------------------------------------------
# Parameter setup (glue, plain JAX): sinusoidal positional-encoding table.
# ----------------------------------------------------------------------------
def make_pe_table(d_model: int, max_len: int) -> jnp.ndarray:
    position = jnp.arange(0, max_len, dtype=jnp.float32)[:, None]            # (L, 1)
    div_term = jnp.exp(
        jnp.arange(0, d_model, 2, dtype=jnp.float32) * (-math.log(10000.0) / d_model)
    )                                                                        # (D/2,)
    pe = jnp.zeros((max_len, d_model), dtype=jnp.float32)
    pe = pe.at[:, 0::2].set(jnp.sin(position * div_term))
    pe = pe.at[:, 1::2].set(jnp.cos(position * div_term))
    return pe                                                                # (L, D)


# ----------------------------------------------------------------------------
# Kernels. Blocks: x/out (TILE_B, TILE_R, 128), pe (TILE_R, 128).
# Grid is (row_tiles, batch_tiles): pe's block index is constant across the
# inner batch loop, so Pallas skips its re-fetch.
# ----------------------------------------------------------------------------
def _pe_add_kernel(x_ref, pe_ref, o_ref):
    # Eval mode: dropout is identity. pe broadcasts over the leading batch dim.
    o_ref[...] = (x_ref[...] + pe_ref[...]).astype(o_ref.dtype)


def _pe_add_dropout_hw_kernel(seed_ref, x_ref, pe_ref, o_ref, *, p: float):
    # Training mode on real TPU: hardware PRNG, seeded per (row_tile, batch_tile)
    # block so all grid steps are independent ("parallel" semantics stay valid).
    t = pl.program_id(0)
    b = pl.program_id(1)
    pltpu.prng_seed(seed_ref[0], t, b)

    y = x_ref[...].astype(jnp.float32) + pe_ref[...].astype(jnp.float32)
    bits = pltpu.prng_random_bits(y.shape)
    if bits.dtype != jnp.uint32:
        bits = pltpu.bitcast(bits, jnp.uint32)

    thresh = jnp.uint32(min(int(round(p * 4294967296.0)), 4294967295))
    keep = bits >= thresh                               # drop iff bits < p * 2^32
    scale = jnp.float32(1.0 / (1.0 - p))
    o_ref[...] = (y * (keep.astype(jnp.float32) * scale)).astype(o_ref.dtype)


def _hash_u32(x):
    # Portable splitmix-style finalizer (fallback only; pure VPU u32 ops).
    x = x ^ (x >> jnp.uint32(16))
    x = x * jnp.uint32(0x7FEB352D)
    x = x ^ (x >> jnp.uint32(15))
    x = x * jnp.uint32(0x846CA68B)
    x = x ^ (x >> jnp.uint32(16))
    return x


def _pe_add_dropout_hash_kernel(seed_ref, x_ref, pe_ref, o_ref, *,
                                p: float, n_rows: int, n_cols: int):
    # Non-TPU / interpret-mode fallback: counter-based hash PRNG.
    t = pl.program_id(0)
    b = pl.program_id(1)
    tb, tr, c = x_ref.shape

    y = x_ref[...].astype(jnp.float32) + pe_ref[...].astype(jnp.float32)

    bi = lax.broadcasted_iota(jnp.uint32, (tb, tr, c), 0) + (b * tb).astype(jnp.uint32)
    ri = lax.broadcasted_iota(jnp.uint32, (tb, tr, c), 1) + (t * tr).astype(jnp.uint32)
    li = lax.broadcasted_iota(jnp.uint32, (tb, tr, c), 2)
    flat = (bi * jnp.uint32(n_rows) + ri) * jnp.uint32(n_cols) + li

    seed_u32 = seed_ref[0].astype(jnp.uint32)
    bits = _hash_u32(flat ^ _hash_u32(seed_u32 + jnp.uint32(1)))

    thresh = jnp.uint32(min(int(round(p * 4294967296.0)), 4294967295))
    keep = bits >= thresh
    scale = jnp.float32(1.0 / (1.0 - p))
    o_ref[...] = (y * (keep.astype(jnp.float32) * scale)).astype(o_ref.dtype)


# ----------------------------------------------------------------------------
# Wrapper
# ----------------------------------------------------------------------------
def positional_encoding_forward(x, pe_table, *, p: float = 0.1,
                                training: bool = False, seed: int = 0):
    """x: (B, S, D).  pe_table: (max_len, D)."""
    B, S, D = x.shape
    total = S * D
    C = _LANE
    R = -(-total // C)          # rows after flattening (S, D) lane-dense
    pad = R * C - total

    # pe prep (slice/cast/pad/reshape) is tiny XLA glue; precompute it per
    # dtype outside the hot loop if calling repeatedly.
    pe = pe_table[:S, :]
    if pe.dtype != x.dtype:
        pe = pe.astype(x.dtype)

    # Lane-dense view: flatten (S, D) row-major and pad up to a multiple of
    # 128 so every store is a full-lane vst (no masked partial stores).
    x_flat = x.reshape(B, total)
    pe_flat = pe.reshape(total)
    if pad:
        x_flat = jnp.pad(x_flat, ((0, 0), (0, pad)))
        pe_flat = jnp.pad(pe_flat, ((0, pad),))
    xv = x_flat.reshape(B, R, C)
    pev = pe_flat.reshape(R, C)

    # Tile selection: ~2 MiB blocks.
    #  - Large R: tile along rows (tile_b = 1), tile_r a multiple of 32.
    #  - Small R: keep the full row plane resident and tile along batch so
    #    blocks don't collapse into tiny grid steps.
    itemsize = jnp.dtype(x.dtype).itemsize
    rows_per_block = max(32, _TARGET_BLOCK_BYTES // (C * itemsize))
    if R <= rows_per_block:
        tile_r = R
        tile_b = max(1, min(B, _TARGET_BLOCK_BYTES // max(1, R * C * itemsize)))
    else:
        tile_b = 1
        tile_r = (rows_per_block // 32) * 32
    grid = (pl.cdiv(R, tile_r), pl.cdiv(B, tile_b))   # (row_tiles, batch_tiles)

    x_spec = pl.BlockSpec((tile_b, tile_r, C), lambda t, b, *pf: (b, t, 0))
    pe_spec = pl.BlockSpec((tile_r, C), lambda t, b, *pf: (t, 0))   # constant over inner axis
    out_spec = pl.BlockSpec((tile_b, tile_r, C), lambda t, b, *pf: (b, t, 0))
    out_shape = jax.ShapeDtypeStruct((B, R, C), x.dtype)
    cparams = pltpu.CompilerParams(
        dimension_semantics=("parallel", "parallel"),
        vmem_limit_bytes=32 << 20,
    )

    if (not training) or p == 0.0:
        yv = pl.pallas_call(
            _pe_add_kernel,
            out_shape=out_shape,
            grid_spec=pltpu.PrefetchScalarGridSpec(
                num_scalar_prefetch=0,
                grid=grid,
                in_specs=[x_spec, pe_spec],
                out_specs=out_spec,
            ),
            compiler_params=cparams,
        )(xv, pev)
    else:
        seed_arr = jnp.asarray([seed], dtype=jnp.int32)
        if jax.default_backend() == "tpu":
            kern = functools.partial(_pe_add_dropout_hw_kernel, p=p)
        else:
            # TODO(synk): hash fallback mask is tiling-dependent (not bit-identical
            # to the HW-PRNG path); used only off-TPU / in interpret mode.
            kern = functools.partial(_pe_add_dropout_hash_kernel,
                                     p=p, n_rows=R, n_cols=C)
        yv = pl.pallas_call(
            kern,
            out_shape=out_shape,
            grid_spec=pltpu.PrefetchScalarGridSpec(
                num_scalar_prefetch=1,
                grid=grid,
                in_specs=[x_spec, pe_spec],
                out_specs=out_spec,
            ),
            compiler_params=cparams,
        )(seed_arr, xv, pev)

    return yv.reshape(B, R * C)[:, :total].reshape(B, S, D)


# ----------------------------------------------------------------------------
# Main
# ----------------------------------------------------------------------------
if __name__ == "__main__":
    d_model = 32
    max_len = 64
    batch, seq = 2, 8
    p = 0.1

    key = jax.random.PRNGKey(0)
    x = jax.random.normal(key, (batch, seq, d_model), dtype=jnp.float32)
    pe_table = make_pe_table(d_model, max_len)

    # Eval-mode forward (dropout = identity), verified against a pure-JAX ref.
    y = positional_encoding_forward(x, pe_table, p=p, training=False)
    y = jax.block_until_ready(y)
    y_ref = x + pe_table[None, :seq, :]
    assert jnp.allclose(y, y_ref, atol=1e-6), "eval mismatch vs reference"

    # Padded lane-dense path (S*D not a multiple of 128).
    x2 = jax.random.normal(jax.random.PRNGKey(1), (batch, 5, 24), dtype=jnp.float32)
    pe2 = make_pe_table(24, max_len)
    y2 = jax.block_until_ready(
        positional_encoding_forward(x2, pe2, p=p, training=False))
    assert jnp.allclose(y2, x2 + pe2[None, :5, :], atol=1e-6), "padded-path mismatch"

    # Training-mode (dropout): every element is either 0 (dropped) or
    # (x + pe) / (1 - p) (kept), and not everything is dropped.
    y_tr = positional_encoding_forward(x, pe_table, p=p, training=True, seed=123)
    y_tr = jax.block_until_ready(y_tr)
    kept_val = y_ref / (1.0 - p)
    ok = jnp.isclose(y_tr, 0.0, atol=1e-6) | jnp.isclose(y_tr, kept_val,
                                                         atol=1e-5, rtol=1e-5)
    assert bool(jnp.all(ok)), "dropout mismatch"
    assert bool(jnp.any(~jnp.isclose(y_tr, 0.0, atol=1e-6))), "dropout dropped everything"

    print("KERNEL_OK")
</pallas_src>

<mosaic_0001>
module attributes {stable_mosaic.version = 11 : i64} {
  func.func @_pe_add_kernel(%arg0: i32, %arg1: i32, %arg2: memref<2x2x128xf32, #tpu.memory_space<vmem>>, %arg3: memref<2x128xf32, #tpu.memory_space<vmem>>, %arg4: memref<2x2x128xf32, #tpu.memory_space<vmem>>) attributes {dimension_semantics = [#tpu.dimension_semantics<parallel>, #tpu.dimension_semantics<parallel>], iteration_bounds = array<i64: 1, 1>, scalar_prefetch = 0 : i64, scratch_operands = 0 : i64, tpu.core_type = #tpu.core_type<tc>, window_params = [{transform_indices = @transform_0, window_bounds = array<i64: 2, 2, 128>}, {transform_indices = @transform_1, window_bounds = array<i64: 2, 128>}, {transform_indices = @transform_2, window_bounds = array<i64: 2, 2, 128>}]} {
    %c0 = arith.constant 0 : index
    %c0_0 = arith.constant 0 : index
    %c0_1 = arith.constant 0 : index
    %0 = vector.load %arg2[%c0, %c0_0, %c0_1] : memref<2x2x128xf32, #tpu.memory_space<vmem>>, vector<2x2x128xf32>
    %c0_2 = arith.constant 0 : index
    %c0_3 = arith.constant 0 : index
    %1 = vector.load %arg3[%c0_2, %c0_3] : memref<2x128xf32, #tpu.memory_space<vmem>>, vector<2x128xf32>
    %2 = vector.shape_cast %1 : vector<2x128xf32> to vector<1x2x128xf32>
    %3 = vector.broadcast %2 : vector<1x2x128xf32> to vector<2x2x128xf32>
    %4 = arith.addf %0, %3 : vector<2x2x128xf32>
    %c0_4 = arith.constant 0 : index
    %c0_5 = arith.constant 0 : index
    %c0_6 = arith.constant 0 : index
    %5 = vector.load %arg4[%c0_4, %c0_5, %c0_6] : memref<2x2x128xf32, #tpu.memory_space<vmem>>, vector<2x2x128xf32>
    tpu.vector_store %arg4[%c0_4, %c0_5, %c0_6], %4 {strides = array<i32>} : memref<2x2x128xf32, #tpu.memory_space<vmem>>, vector<2x2x128xf32>,
    return
  }
  func.func @transform_0(%arg0: i32, %arg1: i32) -> (i32, i32, i32) {
    %c0_i32 = arith.constant 0 : i32
    %c0_i32_0 = arith.constant 0 : i32
    return %arg1, %arg0, %c0_i32 : i32, i32, i32
  }
  func.func @transform_1(%arg0: i32, %arg1: i32) -> (i32, i32) {
    %c0_i32 = arith.constant 0 : i32
    %c0_i32_0 = arith.constant 0 : i32
    return %arg0, %c0_i32 : i32, i32
  }
  func.func @transform_2(%arg0: i32, %arg1: i32) -> (i32, i32, i32) {
    %c0_i32 = arith.constant 0 : i32
    %c0_i32_0 = arith.constant 0 : i32
    return %arg1, %arg0, %c0_i32 : i32, i32, i32
  }
}

</mosaic_0001>

<bundles_post_ra>
// kernel: tpu_custom_call.1
= control target key start
LH: loop header
LB: loop body
LE: loop exit
PB: predicated region body
PF: predicated region fallthrough
CT: control target
= control target key end

     0   :  { %7 = vsyncpa [#allocation3], 0  ;;  %s154_s0 = inlined_call_operand.hbm [shape: f32[2,2,128], index: 0, kind: input, shape index: {}]   ;;  %s155_s1 = inlined_call_operand.vmem [shape: f32[2,128], index: 1, kind: input, shape index: {}]   ;;  %s156_s2 = inlined_call_operand.hbm [shape: f32[2,2,128], index: 2, kind: output, shape index: {}]  }
   0x1   :  { %8 = vsyncpa [#allocation4], 0  ;;  %s102_s9 = smov [#allocation2]   ;;  %s54_s13 = scalar_lea.hbm %s154_s0, 64 }
   0x2   :  { %s14_s10 = sshll.u32 %s102_s9, 4  ;;  %p55_p0 = scmp.ne.s32.totalorder %s154_s0, %s54_s13  ;;  %s15_s10 = int_to_ptr.vmem [resolvable:$true] %s14_s10 }
   0x3   :  { %p58_p1 = scmp.lt.u32.totalorder %s54_s13, %s154_s0 }
   0x5   :  { %p60_p2 = pnand %p58_p1, %p55_p0 }
   0x7   :  { %63 = shalt.err (!%p60_p2)
}
   0x8   :  { %s64_s18 = scalar_lea.vmem %s15_s10, 64  ;;  %p69_p4 = scmp.lt.s32.totalorder %s15_s10, %s15_s10 }
   0x9   :  { %p65_p3 = scmp.ne.s32.totalorder %s15_s10, %s64_s18  ;;  %p70_p5 = scmp.lt.s32.totalorder %s64_s18, %s64_s18 }
   0xb   :  { %p71_p6 = por %p70_p5, %p69_p4 }
   0xd   :  { %p72_p7 = pnand %p71_p6, %p65_p3 }
   0xf   :  { %75 = shalt.err (!%p72_p7)
}
  0x10   :  { %s103_s19 = smov 32   ;;  %s104_s20 = smov 2  }
  0x11   :  { %20 = dma.hbm_to_vmem [thread:$0]  %s154_s0, 64, %s15_s10, [#allocation3], %s103_s19, %s103_s19, %s104_s20  }
  0x12   :  { %98 = dma.done.wait [#allocation3], 64  }
  0x13   :  { %99 = vsyncadd [#allocation3], 4294967232  ;;  %s105_s23 = smov [#allocation5]   ;;  %v26_v0 = vld [vmem:[#allocation2] sm:$0x3] }
  0x14   :  { %s38_s24 = sshll.u32 %s105_s23, 4  ;;  %v28_v1 = vld [vmem:[%s155_s1] sm:$0x3]  ;;  %v27_v2 = vld [vmem:[#allocation2 + $0x2] sm:$0x3]  ;;  %s39_s24 = int_to_ptr.vmem [resolvable:$true] %s38_s24 }
  0x15   :  { %v29_v3 = vadd.f32 %v28_v1, %v26_v0  ;;  %v30_v4 = vadd.f32 %v28_v1, %v27_v2  ;;  %s76_s27 = scalar_lea.vmem %s39_s24, 64  ;;  %p81_p9 = scmp.lt.s32.totalorder %s39_s24, %s39_s24 }
  0x16   :  { %p77_p8 = scmp.ne.s32.totalorder %s39_s24, %s76_s27  ;;  %p82_p10 = scmp.lt.s32.totalorder %s76_s27, %s76_s27 }
  0x17   :  { %31 = vst [vmem:[#allocation5] sm:$0x3] %v29_v3  ;;  %32 = vst [vmem:[#allocation5 + $0x2] sm:$0x3] %v30_v4 }
  0x18   :  { %p83_p11 = por %p82_p10, %p81_p9 }
  0x1a   :  { %p84_p12 = pnand %p83_p11, %p77_p8 }
  0x1c   :  { %87 = shalt.err (!%p84_p12)
}
  0x1d   :  { %s88_s29 = scalar_lea.hbm %s156_s2, 64 }
  0x1e   :  { %p89_p13 = scmp.ne.s32.totalorder %s156_s2, %s88_s29  ;;  %p92_p0 = scmp.lt.u32.totalorder %s88_s29, %s156_s2 }
  0x20   :  { %p94_p1 = pnand %p92_p0, %p89_p13 }
  0x22   :  { %97 = shalt.err (!%p94_p1)
}
  0x23   :  { %44 = dma.vmem_to_hbm [thread:$0]  %s39_s24, 64, %s156_s2, [#allocation4], %s103_s19, %s103_s19, %s104_s20  }
  0x24   :  { %100 = dma.done.wait [#allocation4], 64  }
  0x25   :  { %101 = vsyncadd [#allocation4], 4294967232 }
  0x26   :  { %48 = vsyncpa [#allocation3], 1 }
  0x27   :  { %49 = vsyncpa [#allocation4], 1 }

</bundles_post_ra>
